<compile_context>
chip_gen: v6e
topology: v6e:2x2x1
jax: 0.10.0
libtpu: 0.0.40
codegen_flags: <defaults>
</compile_context>

<pallas_src>
import math

import jax
import jax.numpy as jnp
from jax.experimental import pallas as pl
from jax.experimental.pallas import tpu as pltpu

TIME_DIM = 16


def _round_up(v, m):
    return (v + m - 1) // m * m


def _mish(x):
    # mish(x) = x * tanh(softplus(x));  tanh(softplus(x)) = (w-1)/(w+1), w=(1+e^x)^2.
    # One EUP exp + one approx EUP reciprocal per element.
    # NOTE: for large x, exp(x) -> inf gives inf*rcp = NaN in the *unselected*
    # branch of jnp.where; this is safe because select does not propagate the
    # unselected lane.  Do not replace the where with arithmetic masking.
    # TODO(synk): if a bundle dump shows the single EUP slot saturating on
    # v6e/v7x, compute the exp in bf16 there (keep f32 on v5e: no bf16 EUP).
    w = 1.0 + jnp.exp(x)
    w = w * w
    t = (w - 1.0) * pl.reciprocal(w + 1.0, approx=True)
    return jnp.where(x > 20.0, x, x * t)


def pack_params(params, state_dim, action_dim, time_dim=TIME_DIM):
    """Pack the 14 tiny tensors into one bf16 weight slab + one f32 bias slab.

    Call ONCE (outside the sampling loop) and reuse the slabs -- repacking every
    forward call costs more XLA ops / HBM traffic than the kernel itself.

    Weights keep the PyTorch nn.Linear (out_features, in_features) layout (what
    the batch-on-lanes kernel needs) and are cast to bf16 once so the MXU uses
    its native single-pass path (f32 accumulation happens in-kernel).
    mw1 is split by columns in the concat order [x|state, t_emb]; tw1 is split
    into sin-columns / cos-columns so the kernel never concatenates.
    """
    A, S, T = action_dim, state_dim, time_dim
    half = T // 2
    mw1, tw1 = params["mw1"], params["tw1"]
    w_blocks = [
        ("tw1s", tw1[:, :half]),              # (2T, T/2) -- multiplies sin(ang)
        ("tw1c", tw1[:, half:T]),             # (2T, T/2) -- multiplies cos(ang)
        ("tw2", params["tw2"]),               # (T, 2T)
        ("m1xs", mw1[:, :A + S]),             # (H, A+S)  -- concat([x, state])
        ("m1t", mw1[:, A + S:A + S + T]),     # (H, T)    -- t_emb columns
        ("mw2", params["mw2"]),               # (H, H)
        ("mw3", params["mw3"]),               # (H, H)
        ("fw", params["fw"]),                 # (A, H)
    ]
    b_blocks = [
        ("tb1", params["tb1"]), ("tb2", params["tb2"]),
        ("mb1", params["mb1"]), ("mb2", params["mb2"]),
        ("mb3", params["mb3"]), ("fb", params["fb"]),
    ]

    w_width = _round_up(max(w.shape[1] for _, w in w_blocks), 128)
    w_offs, w_rows, r = {}, [], 0
    for name, w in w_blocks:
        out_d, in_d = w.shape
        w_offs[name] = (r, out_d, in_d)
        pad_r = _round_up(out_d, 16)          # keep offsets bf16-sublane-tile aligned
        w_rows.append(jnp.pad(w.astype(jnp.bfloat16),
                              ((0, pad_r - out_d), (0, w_width - in_d))))
        r += pad_r
    w_slab = jnp.concatenate(w_rows, axis=0)  # [R_w, w_width] bf16

    # Biases: lane-major f32 slab; column j holds bias j (one small tile, f32
    # kept for numerics -- the adds are on f32 accumulators anyway).
    max_out = _round_up(max(b.shape[0] for _, b in b_blocks), 8)
    n_cols = _round_up(len(b_blocks), 8)
    b_offs, b_cols = {}, []
    for j, (name, b) in enumerate(b_blocks):
        out_d = b.shape[0]
        b_offs[name] = (j, out_d)
        b_cols.append(jnp.pad(b.astype(jnp.float32).reshape(-1, 1),
                              ((0, max_out - out_d), (0, 0))))
    b_cols.append(jnp.zeros((max_out, n_cols - len(b_blocks)), jnp.float32))
    b_slab = jnp.concatenate(b_cols, axis=1)  # [max_out, 8] f32

    return w_slab, b_slab, w_offs, b_offs


def _make_kernel(w_offs, b_offs, time_dim):
    f32, bf16 = jnp.float32, jnp.bfloat16
    half = time_dim // 2
    log_scale = -math.log(10000.0) / (half - 1)

    def kernel(xs_ref, t_ref, w_ref, b_ref, o_ref):
        # Static slab views (zero-cost static slices; slabs are VMEM-resident).
        def W(name):
            r0, out_d, in_d = w_offs[name]
            return w_ref[r0:r0 + out_d, 0:in_d]          # bf16 [out, in]

        def B(name):
            c, out_d = b_offs[name]
            return b_ref[0:out_d, c:c + 1]               # f32 [out, 1] -> lane bcast

        def dot(w, a):
            return jnp.dot(w, a, preferred_element_type=f32)

        # ---- sinusoidal embedding, computed in-kernel on the raw time row ----
        idx = jax.lax.broadcasted_iota(jnp.int32, (half, 1), 0).astype(f32)
        freqs = jnp.exp(idx * log_scale)                 # [half, 1]
        ang = freqs * t_ref[...]                         # [half, TB] (f32 angles)
        sin_e = jnp.sin(ang).astype(bf16)
        cos_e = jnp.cos(ang).astype(bf16)

        # ---- time_mlp: Linear(T,2T) -> Mish -> Linear(2T,T) ----
        h = dot(W("tw1s"), sin_e) + dot(W("tw1c"), cos_e) + B("tb1")
        h = _mish(h)
        t_emb = (dot(W("tw2"), h.astype(bf16)) + B("tb2")).astype(bf16)

        # ---- mid_layer: concat([x, state, t_emb]) via split-weight matmuls ----
        h = dot(W("m1xs"), xs_ref[...]) + dot(W("m1t"), t_emb) + B("mb1")
        h = _mish(h)
        h = _mish(dot(W("mw2"), h.astype(bf16)) + B("mb2"))
        h = _mish(dot(W("mw3"), h.astype(bf16)) + B("mb3"))

        # ---- finnal_layer: lane-dense [A, TB] store ----
        o_ref[...] = dot(W("fw"), h.astype(bf16)) + B("fb")

    return kernel


def make_mlp_forward(w_offs, b_offs, *, time_dim=TIME_DIM, block_b=8192,
                     transposed_output=False):
    """Returns a jitted forward(x[B,A], time[B], state[B,S], w_slab, b_slab)."""
    kernel = _make_kernel(w_offs, b_offs, time_dim)

    @jax.jit
    def forward(x, time, state, w_slab, b_slab):
        f32 = jnp.float32
        B, A = x.shape
        S = state.shape[1]

        # Batch tile (lane axis): big -- the kernel is grid-step-overhead / HBM
        # bound and needs only ~1 KB of VMEM per batch column including compute
        # temporaries -- but capped at ceil(B/2) so the "parallel" grid keeps
        # >=2 steps for v7x's 2 TensorCores.
        TB = min(_round_up(block_b, 128), max(128, _round_up((B + 1) // 2, 128)))
        B_pad = _round_up(B, TB)
        pad_b = B_pad - B

        # One fused concat+cast+transpose+pad producing the bf16 [A+S, B_pad]
        # slab (single XLA fusion ~= the unavoidable concat pass).  Raw time
        # stays f32: the sinusoid angles need full precision.
        xsT = jnp.pad(jnp.concatenate([x, state], axis=1).astype(jnp.bfloat16).T,
                      ((0, 0), (0, pad_b)))                         # [A+S, B_pad]
        tT = jnp.pad(time.astype(f32).reshape(1, -1), ((0, 0), (0, pad_b)))

        grid = (B_pad // TB,)
        out_T = pl.pallas_call(
            kernel,
            out_shape=jax.ShapeDtypeStruct((A, B_pad), f32),
            grid_spec=pltpu.PrefetchScalarGridSpec(
                num_scalar_prefetch=0,
                grid=grid,
                in_specs=[
                    pl.BlockSpec((A + S, TB), lambda i: (0, i)),    # [x|state] tile
                    pl.BlockSpec((1, TB), lambda i: (0, i)),        # raw time tile
                    # Constant-index blocks stay VMEM-resident; Pallas does not
                    # re-DMA a block whose index_map result is unchanged.
                    pl.BlockSpec(w_slab.shape, lambda i: (0, 0)),   # weights (bf16)
                    pl.BlockSpec(b_slab.shape, lambda i: (0, 0)),   # biases  (f32)
                ],
                out_specs=pl.BlockSpec((A, TB), lambda i: (0, i)),
            ),
            compiler_params=pltpu.CompilerParams(
                dimension_semantics=("parallel",),
                vmem_limit_bytes=32 * 1024 * 1024,
            ),
        )(xsT, tT, w_slab, b_slab)

        if transposed_output:
            return out_T[:, :B]      # [A, B]: skip the extra output transpose pass
        return out_T[:, :B].T        # [B, A]: matches the PyTorch module

    return forward


# ----------------------------- reference / init -----------------------------

def _xavier_uniform(key, fan_out, fan_in):
    limit = math.sqrt(6.0 / (fan_in + fan_out))
    return jax.random.uniform(key, (fan_out, fan_in), jnp.float32, -limit, limit)


def init_params(key, state_dim, action_dim, hidden_dim, time_dim=TIME_DIM):
    """Weights in the PyTorch nn.Linear (out_features, in_features) layout."""
    input_dim = state_dim + action_dim + time_dim
    keys = jax.random.split(key, 6)
    return {
        "tw1": _xavier_uniform(keys[0], time_dim * 2, time_dim),
        "tb1": jnp.zeros((time_dim * 2,), jnp.float32),
        "tw2": _xavier_uniform(keys[1], time_dim, time_dim * 2),
        "tb2": jnp.zeros((time_dim,), jnp.float32),
        "mw1": _xavier_uniform(keys[2], hidden_dim, input_dim),
        "mb1": jnp.zeros((hidden_dim,), jnp.float32),
        "mw2": _xavier_uniform(keys[3], hidden_dim, hidden_dim),
        "mb2": jnp.zeros((hidden_dim,), jnp.float32),
        "mw3": _xavier_uniform(keys[4], hidden_dim, hidden_dim),
        "mb3": jnp.zeros((hidden_dim,), jnp.float32),
        "fw": _xavier_uniform(keys[5], action_dim, hidden_dim),
        "fb": jnp.zeros((action_dim,), jnp.float32),
    }


def mlp_reference(x, time, state, params, time_dim=TIME_DIM):
    """Pure-JAX f32 reference with the exact (stable-softplus) Mish."""
    def mish(v):
        sp = jnp.maximum(v, 0.0) + jnp.log1p(jnp.exp(-jnp.abs(v)))
        return v * jnp.tanh(sp)

    half = time_dim // 2
    freqs = jnp.exp(jnp.arange(half, dtype=jnp.float32) * (-math.log(10000.0) / (half - 1)))
    ang = time.astype(jnp.float32)[:, None] * freqs[None, :]
    sincos = jnp.concatenate([jnp.sin(ang), jnp.cos(ang)], axis=1)

    h = mish(sincos @ params["tw1"].T + params["tb1"])
    t_emb = h @ params["tw2"].T + params["tb2"]
    feat = jnp.concatenate([x, state, t_emb], axis=1)
    h = mish(feat @ params["mw1"].T + params["mb1"])
    h = mish(h @ params["mw2"].T + params["mb2"])
    h = mish(h @ params["mw3"].T + params["mb3"])
    return h @ params["fw"].T + params["fb"]


if __name__ == "__main__":
    B, state_dim, action_dim, hidden_dim = 2, 8, 4, 32

    key = jax.random.PRNGKey(0)
    k_params, k_x, k_s, k_t = jax.random.split(key, 4)

    params = init_params(k_params, state_dim, action_dim, hidden_dim)

    x = jax.random.normal(k_x, (B, action_dim), jnp.float32)          # noisy action
    state = jax.random.normal(k_s, (B, state_dim), jnp.float32)
    time = jax.random.randint(k_t, (B,), 0, 100).astype(jnp.float32)  # diffusion timestep

    # Pack the 14 parameter tensors ONCE (hoisted out of the per-call path) and
    # build the jitted forward once; reuse both across all denoising steps.
    w_slab, b_slab, w_offs, b_offs = pack_params(params, state_dim, action_dim)
    forward = make_mlp_forward(w_offs, b_offs)

    out = jax.block_until_ready(forward(x, time, state, w_slab, b_slab))
    assert out.shape == (B, action_dim) and out.dtype == jnp.float32

    # Tolerance covers bf16 MXU operands + the approximate EUP reciprocal in Mish.
    ref = mlp_reference(x, time, state, params)
    assert jnp.allclose(out, ref, rtol=5e-2, atol=5e-2), (out, ref)

    print("KERNEL_OK")
</pallas_src>

<mosaic_0001>
module attributes {stable_mosaic.version = 11 : i64} {
  func.func @kernel(%arg0: i32, %arg1: memref<12x128xbf16, #tpu.memory_space<vmem>>, %arg2: memref<1x128xf32, #tpu.memory_space<vmem>>, %arg3: memref<224x128xbf16, #tpu.memory_space<vmem>>, %arg4: memref<32x8xf32, #tpu.memory_space<vmem>>, %arg5: memref<4x128xf32, #tpu.memory_space<vmem>>) attributes {dimension_semantics = [#tpu.dimension_semantics<parallel>], iteration_bounds = array<i64: 1>, scalar_prefetch = 0 : i64, scratch_operands = 0 : i64, tpu.core_type = #tpu.core_type<tc>, window_params = [{transform_indices = @transform_0, window_bounds = array<i64: 12, 128>}, {transform_indices = @transform_1, window_bounds = array<i64: 1, 128>}, {pipeline_mode = #tpu.pipeline_mode<synchronous>, transform_indices = @transform_2, window_bounds = array<i64: 224, 128>}, {pipeline_mode = #tpu.pipeline_mode<synchronous>, transform_indices = @transform_3, window_bounds = array<i64: 32, 8>}, {transform_indices = @transform_4, window_bounds = array<i64: 4, 128>}]} {
    %0 = tpu.iota {dimensions = array<i32: 0>} : vector<8x1xi32>
    %1 = arith.sitofp %0 : vector<8x1xi32> to vector<8x1xf32>
    %cst = arith.constant -1.31576288 : f32
    %2 = vector.broadcast %cst : f32 to vector<8x1xf32>
    %3 = arith.mulf %1, %2 : vector<8x1xf32>
    %4 = math.exp %3 : vector<8x1xf32>
    %c0 = arith.constant 0 : index
    %c0_0 = arith.constant 0 : index
    %5 = vector.load %arg2[%c0, %c0_0] : memref<1x128xf32, #tpu.memory_space<vmem>>, vector<1x128xf32>
    %6 = vector.broadcast %4 : vector<8x1xf32> to vector<8x128xf32>
    %7 = vector.broadcast %5 : vector<1x128xf32> to vector<8x128xf32>
    %8 = arith.mulf %6, %7 : vector<8x128xf32>
    %9 = math.sin %8 : vector<8x128xf32>
    %10 = arith.truncf %9 : vector<8x128xf32> to vector<8x128xbf16>
    %11 = math.cos %8 : vector<8x128xf32>
    %12 = arith.truncf %11 : vector<8x128xf32> to vector<8x128xbf16>
    %c0_1 = arith.constant 0 : index
    %c0_2 = arith.constant 0 : index
    %13 = vector.load %arg3[%c0_1, %c0_2] : memref<224x128xbf16, #tpu.memory_space<vmem>>, vector<32x8xbf16>
    %cst_3 = arith.constant dense<0.000000e+00> : vector<32x128xf32>
    %14 = tpu.matmul %13, %10, %cst_3 {dimension_numbers = #tpu.dot_dimension_numbers<[1], [0], [0], [1], [0, 0, 1, 1], [], []>} : vector<32x8xbf16>, vector<8x128xbf16>, vector<32x128xf32> -> vector<32x128xf32>
    %c32 = arith.constant 32 : index
    %c0_4 = arith.constant 0 : index
    %15 = vector.load %arg3[%c32, %c0_4] : memref<224x128xbf16, #tpu.memory_space<vmem>>, vector<32x8xbf16>
    %cst_5 = arith.constant dense<0.000000e+00> : vector<32x128xf32>
    %16 = tpu.matmul %15, %12, %cst_5 {dimension_numbers = #tpu.dot_dimension_numbers<[1], [0], [0], [1], [0, 0, 1, 1], [], []>} : vector<32x8xbf16>, vector<8x128xbf16>, vector<32x128xf32> -> vector<32x128xf32>
    %17 = arith.addf %14, %16 : vector<32x128xf32>
    %c0_6 = arith.constant 0 : index
    %c0_7 = arith.constant 0 : index
    %18 = vector.load %arg4[%c0_6, %c0_7] : memref<32x8xf32, #tpu.memory_space<vmem>>, vector<32x1xf32>
    %19 = vector.broadcast %18 : vector<32x1xf32> to vector<32x128xf32>
    %20 = arith.addf %17, %19 : vector<32x128xf32>
    %21 = math.exp %20 : vector<32x128xf32>
    %cst_8 = arith.constant 1.000000e+00 : f32
    %22 = vector.broadcast %cst_8 : f32 to vector<32x128xf32>
    %23 = arith.addf %22, %21 : vector<32x128xf32>
    %24 = arith.mulf %23, %23 : vector<32x128xf32>
    %cst_9 = arith.constant 1.000000e+00 : f32
    %25 = vector.broadcast %cst_9 : f32 to vector<32x128xf32>
    %26 = arith.subf %24, %25 : vector<32x128xf32>
    %cst_10 = arith.constant 1.000000e+00 : f32
    %27 = vector.broadcast %cst_10 : f32 to vector<32x128xf32>
    %28 = arith.addf %24, %27 : vector<32x128xf32>
    %29 = tpu.reciprocal %28 {approx = true} : vector<32x128xf32> -> vector<32x128xf32>
    %30 = arith.mulf %26, %29 : vector<32x128xf32>
    %cst_11 = arith.constant 2.000000e+01 : f32
    %31 = vector.broadcast %cst_11 : f32 to vector<32x128xf32>
    %32 = arith.cmpf ogt, %20, %31 : vector<32x128xf32>
    %33 = arith.mulf %20, %30 : vector<32x128xf32>
    %34 = arith.select %32, %20, %33 : vector<32x128xi1>, vector<32x128xf32>
    %c64 = arith.constant 64 : index
    %c0_12 = arith.constant 0 : index
    %35 = vector.load %arg3[%c64, %c0_12] : memref<224x128xbf16, #tpu.memory_space<vmem>>, vector<16x32xbf16>
    %36 = arith.truncf %34 : vector<32x128xf32> to vector<32x128xbf16>
    %cst_13 = arith.constant dense<0.000000e+00> : vector<16x128xf32>
    %37 = tpu.matmul %35, %36, %cst_13 {dimension_numbers = #tpu.dot_dimension_numbers<[1], [0], [0], [1], [0, 0, 1, 1], [], []>} : vector<16x32xbf16>, vector<32x128xbf16>, vector<16x128xf32> -> vector<16x128xf32>
    %c0_14 = arith.constant 0 : index
    %c1 = arith.constant 1 : index
    %38 = vector.load %arg4[%c0_14, %c1] : memref<32x8xf32, #tpu.memory_space<vmem>>, vector<16x1xf32>
    %39 = vector.broadcast %38 : vector<16x1xf32> to vector<16x128xf32>
    %40 = arith.addf %37, %39 : vector<16x128xf32>
    %41 = arith.truncf %40 : vector<16x128xf32> to vector<16x128xbf16>
    %c80 = arith.constant 80 : index
    %c0_15 = arith.constant 0 : index
    %42 = vector.load %arg3[%c80, %c0_15] : memref<224x128xbf16, #tpu.memory_space<vmem>>, vector<32x12xbf16>
    %c0_16 = arith.constant 0 : index
    %c0_17 = arith.constant 0 : index
    %43 = vector.load %arg1[%c0_16, %c0_17] : memref<12x128xbf16, #tpu.memory_space<vmem>>, vector<12x128xbf16>
    %cst_18 = arith.constant dense<0.000000e+00> : vector<32x128xf32>
    %44 = tpu.matmul %42, %43, %cst_18 {dimension_numbers = #tpu.dot_dimension_numbers<[1], [0], [0], [1], [0, 0, 1, 1], [], []>} : vector<32x12xbf16>, vector<12x128xbf16>, vector<32x128xf32> -> vector<32x128xf32>
    %c112 = arith.constant 112 : index
    %c0_19 = arith.constant 0 : index
    %45 = vector.load %arg3[%c112, %c0_19] : memref<224x128xbf16, #tpu.memory_space<vmem>>, vector<32x16xbf16>
    %cst_20 = arith.constant dense<0.000000e+00> : vector<32x128xf32>
    %46 = tpu.matmul %45, %41, %cst_20 {dimension_numbers = #tpu.dot_dimension_numbers<[1], [0], [0], [1], [0, 0, 1, 1], [], []>} : vector<32x16xbf16>, vector<16x128xbf16>, vector<32x128xf32> -> vector<32x128xf32>
    %47 = arith.addf %44, %46 : vector<32x128xf32>
    %c0_21 = arith.constant 0 : index
    %c2 = arith.constant 2 : index
    %48 = vector.load %arg4[%c0_21, %c2] : memref<32x8xf32, #tpu.memory_space<vmem>>, vector<32x1xf32>
    %49 = vector.broadcast %48 : vector<32x1xf32> to vector<32x128xf32>
    %50 = arith.addf %47, %49 : vector<32x128xf32>
    %51 = math.exp %50 : vector<32x128xf32>
    %cst_22 = arith.constant 1.000000e+00 : f32
    %52 = vector.broadcast %cst_22 : f32 to vector<32x128xf32>
    %53 = arith.addf %52, %51 : vector<32x128xf32>
    %54 = arith.mulf %53, %53 : vector<32x128xf32>
    %cst_23 = arith.constant 1.000000e+00 : f32
    %55 = vector.broadcast %cst_23 : f32 to vector<32x128xf32>
    %56 = arith.subf %54, %55 : vector<32x128xf32>
    %cst_24 = arith.constant 1.000000e+00 : f32
    %57 = vector.broadcast %cst_24 : f32 to vector<32x128xf32>
    %58 = arith.addf %54, %57 : vector<32x128xf32>
    %59 = tpu.reciprocal %58 {approx = true} : vector<32x128xf32> -> vector<32x128xf32>
    %60 = arith.mulf %56, %59 : vector<32x128xf32>
    %cst_25 = arith.constant 2.000000e+01 : f32
    %61 = vector.broadcast %cst_25 : f32 to vector<32x128xf32>
    %62 = arith.cmpf ogt, %50, %61 : vector<32x128xf32>
    %63 = arith.mulf %50, %60 : vector<32x128xf32>
    %64 = arith.select %62, %50, %63 : vector<32x128xi1>, vector<32x128xf32>
    %c144 = arith.constant 144 : index
    %c0_26 = arith.constant 0 : index
    %65 = vector.load %arg3[%c144, %c0_26] : memref<224x128xbf16, #tpu.memory_space<vmem>>, vector<32x32xbf16>
    %66 = arith.truncf %64 : vector<32x128xf32> to vector<32x128xbf16>
    %cst_27 = arith.constant dense<0.000000e+00> : vector<32x128xf32>
    %67 = tpu.matmul %65, %66, %cst_27 {dimension_numbers = #tpu.dot_dimension_numbers<[1], [0], [0], [1], [0, 0, 1, 1], [], []>} : vector<32x32xbf16>, vector<32x128xbf16>, vector<32x128xf32> -> vector<32x128xf32>
    %c0_28 = arith.constant 0 : index
    %c3 = arith.constant 3 : index
    %68 = vector.load %arg4[%c0_28, %c3] : memref<32x8xf32, #tpu.memory_space<vmem>>, vector<32x1xf32>
    %69 = vector.broadcast %68 : vector<32x1xf32> to vector<32x128xf32>
    %70 = arith.addf %67, %69 : vector<32x128xf32>
    %71 = math.exp %70 : vector<32x128xf32>
    %cst_29 = arith.constant 1.000000e+00 : f32
    %72 = vector.broadcast %cst_29 : f32 to vector<32x128xf32>
    %73 = arith.addf %72, %71 : vector<32x128xf32>
    %74 = arith.mulf %73, %73 : vector<32x128xf32>
    %cst_30 = arith.constant 1.000000e+00 : f32
    %75 = vector.broadcast %cst_30 : f32 to vector<32x128xf32>
    %76 = arith.subf %74, %75 : vector<32x128xf32>
    %cst_31 = arith.constant 1.000000e+00 : f32
    %77 = vector.broadcast %cst_31 : f32 to vector<32x128xf32>
    %78 = arith.addf %74, %77 : vector<32x128xf32>
    %79 = tpu.reciprocal %78 {approx = true} : vector<32x128xf32> -> vector<32x128xf32>
    %80 = arith.mulf %76, %79 : vector<32x128xf32>
    %cst_32 = arith.constant 2.000000e+01 : f32
    %81 = vector.broadcast %cst_32 : f32 to vector<32x128xf32>
    %82 = arith.cmpf ogt, %70, %81 : vector<32x128xf32>
    %83 = arith.mulf %70, %80 : vector<32x128xf32>
    %84 = arith.select %82, %70, %83 : vector<32x128xi1>, vector<32x128xf32>
    %c176 = arith.constant 176 : index
    %c0_33 = arith.constant 0 : index
    %85 = vector.load %arg3[%c176, %c0_33] : memref<224x128xbf16, #tpu.memory_space<vmem>>, vector<32x32xbf16>
    %86 = arith.truncf %84 : vector<32x128xf32> to vector<32x128xbf16>
    %cst_34 = arith.constant dense<0.000000e+00> : vector<32x128xf32>
    %87 = tpu.matmul %85, %86, %cst_34 {dimension_numbers = #tpu.dot_dimension_numbers<[1], [0], [0], [1], [0, 0, 1, 1], [], []>} : vector<32x32xbf16>, vector<32x128xbf16>, vector<32x128xf32> -> vector<32x128xf32>
    %c0_35 = arith.constant 0 : index
    %c4 = arith.constant 4 : index
    %88 = vector.load %arg4[%c0_35, %c4] : memref<32x8xf32, #tpu.memory_space<vmem>>, vector<32x1xf32>
    %89 = vector.broadcast %88 : vector<32x1xf32> to vector<32x128xf32>
    %90 = arith.addf %87, %89 : vector<32x128xf32>
    %91 = math.exp %90 : vector<32x128xf32>
    %cst_36 = arith.constant 1.000000e+00 : f32
    %92 = vector.broadcast %cst_36 : f32 to vector<32x128xf32>
    %93 = arith.addf %92, %91 : vector<32x128xf32>
    %94 = arith.mulf %93, %93 : vector<32x128xf32>
    %cst_37 = arith.constant 1.000000e+00 : f32
    %95 = vector.broadcast %cst_37 : f32 to vector<32x128xf32>
    %96 = arith.subf %94, %95 : vector<32x128xf32>
    %cst_38 = arith.constant 1.000000e+00 : f32
    %97 = vector.broadcast %cst_38 : f32 to vector<32x128xf32>
    %98 = arith.addf %94, %97 : vector<32x128xf32>
    %99 = tpu.reciprocal %98 {approx = true} : vector<32x128xf32> -> vector<32x128xf32>
    %100 = arith.mulf %96, %99 : vector<32x128xf32>
    %cst_39 = arith.constant 2.000000e+01 : f32
    %101 = vector.broadcast %cst_39 : f32 to vector<32x128xf32>
    %102 = arith.cmpf ogt, %90, %101 : vector<32x128xf32>
    %103 = arith.mulf %90, %100 : vector<32x128xf32>
    %104 = arith.select %102, %90, %103 : vector<32x128xi1>, vector<32x128xf32>
    %c208 = arith.constant 208 : index
    %c0_40 = arith.constant 0 : index
    %105 = vector.load %arg3[%c208, %c0_40] : memref<224x128xbf16, #tpu.memory_space<vmem>>, vector<4x32xbf16>
    %106 = arith.truncf %104 : vector<32x128xf32> to vector<32x128xbf16>
    %cst_41 = arith.constant dense<0.000000e+00> : vector<4x128xf32>
    %107 = tpu.matmul %105, %106, %cst_41 {dimension_numbers = #tpu.dot_dimension_numbers<[1], [0], [0], [1], [0, 0, 1, 1], [], []>} : vector<4x32xbf16>, vector<32x128xbf16>, vector<4x128xf32> -> vector<4x128xf32>
    %c0_42 = arith.constant 0 : index
    %c5 = arith.constant 5 : index
    %108 = vector.load %arg4[%c0_42, %c5] : memref<32x8xf32, #tpu.memory_space<vmem>>, vector<4x1xf32>
    %109 = vector.broadcast %108 : vector<4x1xf32> to vector<4x128xf32>
    %110 = arith.addf %107, %109 : vector<4x128xf32>
    %c0_43 = arith.constant 0 : index
    %c0_44 = arith.constant 0 : index
    %111 = vector.load %arg5[%c0_43, %c0_44] : memref<4x128xf32, #tpu.memory_space<vmem>>, vector<4x128xf32>
    tpu.vector_store %arg5[%c0_43, %c0_44], %110 {strides = array<i32>} : memref<4x128xf32, #tpu.memory_space<vmem>>, vector<4x128xf32>,
    return
  }
  func.func @transform_0(%arg0: i32) -> (i32, i32) {
    %c0_i32 = arith.constant 0 : i32
    %c0_i32_0 = arith.constant 0 : i32
    return %c0_i32, %arg0 : i32, i32
  }
  func.func @transform_1(%arg0: i32) -> (i32, i32) {
    %c0_i32 = arith.constant 0 : i32
    %c0_i32_0 = arith.constant 0 : i32
    return %c0_i32, %arg0 : i32, i32
  }
  func.func @transform_2(%arg0: i32) -> (i32, i32) {
    %c0_i32 = arith.constant 0 : i32
    %c0_i32_0 = arith.constant 0 : i32
    %c0_i32_1 = arith.constant 0 : i32
    return %c0_i32, %c0_i32_0 : i32, i32
  }
  func.func @transform_3(%arg0: i32) -> (i32, i32) {
    %c0_i32 = arith.constant 0 : i32
    %c0_i32_0 = arith.constant 0 : i32
    %c0_i32_1 = arith.constant 0 : i32
    return %c0_i32, %c0_i32_0 : i32, i32
  }
  func.func @transform_4(%arg0: i32) -> (i32, i32) {
    %c0_i32 = arith.constant 0 : i32
    %c0_i32_0 = arith.constant 0 : i32
    return %c0_i32, %arg0 : i32, i32
  }
}

</mosaic_0001>

<bundles_post_ra>
// kernel: forward.1
= control target key start
LH: loop header
LB: loop body
LE: loop exit
PB: predicated region body
PF: predicated region fallthrough
CT: control target
= control target key end

     0   :  { %9 = vsyncpa [#allocation3], 0  ;;  %s1351_s15 = smov [#allocation2]   ;;  %s1487_s0 = inlined_call_operand.vmem [shape: bf16[12,128], index: 0, kind: input, shape index: {}]   ;;  %s1488_s1 = inlined_call_operand.vmem [shape: f32[1,128], index: 1, kind: input, shape index: {}]   ;;  %s1489_s2 = inlined_call_operand.hbm [shape: bf16[224,128], index: 2, kind: input, shape index: {}]   ;;  %s1490_s3 = inlined_call_operand.vmem [shape: f32[32,8], index: 3, kind: input, shape index: {}]   ;;  %s1491_s4 = inlined_call_operand.vmem [shape: f32[4,128], index: 4, kind: output, shape index: {}]  }
   0x1   :  { %s19_s16 = sshll.u32 %s1351_s15, 4  ;;  %s20_s16 = int_to_ptr.vmem [resolvable:$true] %s19_s16 }
   0x2   :  { %s1337_s17 = scalar_lea.vmem %s20_s16, 1792  ;;  %p1342_p1 = scmp.lt.s32.totalorder %s20_s16, %s20_s16 }
   0x3   :  { %p1338_p0 = scmp.ne.s32.totalorder %s20_s16, %s1337_s17  ;;  %p1343_p2 = scmp.lt.s32.totalorder %s1337_s17, %s1337_s17 }
   0x5   :  { %p1344_p3 = por %p1343_p2, %p1342_p1 }
   0x7   :  { %p1345_p4 = pnand %p1344_p3, %p1338_p0 }
   0x9   :  { %1348 = shalt.err (!%p1345_p4)
}
   0xa   :  { %s1352_s18 = smov 64   ;;  %s1353_s19 = smov 4  }
   0xb   :  { %25 = dma.hbm_to_vmem [thread:$0]  %s1489_s2, 1792, %s20_s16, [#allocation3], %s1352_s18, %s1352_s18, %s1353_s19  }
   0xc   :  { %1349 = dma.done.wait [#allocation3], 1792  }
   0xd   :  { %1350 = vsyncadd [#allocation3], 4294965504  ;;  %v32_v0 = vlaneseq  ;;  %v1354_v3 = vmov 0   ;;  %vm273_vm0 = vcmask 64512   ;;  %v1245_v6 = vld [vmem:[#allocation2 + $0x10] sm:$0xff]   ;;  %v1246_v7 = vld [vmem:[#allocation2] sm:$0xff]  }
   0xe   :  { %1234 = vset.pattern.permute.xlu0 %v1354_v3  ;;  %1235 = vset.pattern.permute.xlu1 %v1354_v3  ;;  %v1401_v8 = vld [vmem:[%s1490_s3 + $0x10] sm:$0xff]  ;;  %v1406_v9 = vld [vmem:[%s1490_s3 + $0x18] sm:$0xff]  ;;  %v1412_v10 = vld [vmem:[%s1490_s3] sm:$0xff]  ;;  %v1355_v26 = vmov 683565275  }
   0xf   :  { %v33_v1 = vshrl.u32 %v32_v0, 7  ;;  %1156 = vmatprep.mubr.msk.bf16.mxu0 %vm273_vm0, %v1245_v6  ;;  %1162 = vmatprep.mubr.msk.bf16.mxu1 %vm273_vm0, %v1246_v7  ;;  %v1417_v11 = vld [vmem:[%s1490_s3 + $0x8] sm:$0xff]  ;;  %v1075_v12 = vld [vmem:[%s1488_s1] ss:$0 sm:$0xff]  ;;  %v1356_v28 = vmov 2475754826  }
  0x10   :  { %417 = vperm.xlu0 %1234, %v1401_v8   ;;  %407 = vperm.xlu1 %1235, %v1412_v10   ;;  %v1357_v30 = vmov 2131351028   ;;  %v1358_v32 = vmov 2102212464   ;;  %v1359_v34 = vmov 920167782  }
  0x11   :  { %v34_v2 = vcvt.s32.f32 %v33_v1  ;;  %v1360_v41 = vmov 1326507024  }
  0x13   :  { %v35_v4 = vmul.f32 -1.3157629, %v34_v2 }
  0x14   :  { %422 = vperm.xlu0 %1234, %v1406_v9   ;;  %412 = vperm.xlu1 %1235, %v1417_v11  }
  0x15   :  { %v36_v5 = vmul.f32 1.442695, %v35_v4 }
  0x17   :  { %1259 = vpow2.f32 %v36_v5 }
  0x24   :  { %v1260_v13 = vpop.eup %1259 }
  0x25   :  { %v1425_v14 = vmul.f32 %v1260_v13, %v1075_v12 }
  0x27   :  { %v49_v15 = vand.u32 2139095040, %v1425_v14  ;;  %v46_v17 = vand.u32 2147483647, %v1425_v14  ;;  %vm48_vm8 = vcmp.lt.s32.totalorder %v1425_v14, 0 }
  0x29   :  { %v50_v16 = vshrl.u32 %v49_v15, 23  ;;  %v53_v20 = vand.u32 8388607, %v46_v17  ;;  %vm47_vm9 = vcmp.le.f32.partialorder %v46_v17, 0.7853982 }
  0x2b   :  { %v1076_v18 = vadd.s32 4294967169, %v50_v16  ;;  %v54_v23 = vor.u32 8388608, %v53_v20 }
  0x2d   :  { %v56_v19 = vadd.s32 1, %v1076_v18  ;;  %v94_v43 = vshll.u32 %v54_v23, 8 }
  0x2f   :  { %vm57_vm1 = vcmp.gt.s32.totalorder %v56_v19, 0 }
  0x30   :  { %v58_v21 = vsel %vm57_vm1, %v56_v19, 0  ;;  %vm138_vm1 = vweird.f32 %v1425_v14 }
  0x31   :  { %v60_v22 = vand.u32 31, %v58_v21  ;;  %v59_v24 = vshrl.u32 %v58_v21, 5 }
  0x33   :  { %v61_v25 = vsub.s32 32, %v60_v22  ;;  %v63_v27 = vshll.u32 %v1355_v26, %v60_v22  ;;  %v66_v29 = vshll.u32 %v1356_v28, %v60_v22  ;;  %v69_v31 = vshll.u32 %v1357_v30, %v60_v22 }
  0x34   :  { %v72_v33 = vshll.u32 %v1358_v32, %v60_v22  ;;  %v75_v35 = vshll.u32 %v1359_v34, %v60_v22  ;;  %vm78_vm2 = vcmp.lt.s32.totalorder %v59_v24, 1  ;;  %vm81_vm3 = vcmp.lt.s32.totalorder %v59_v24, 4 }
  0x35   :  { %v62_v36 = vshrl.u32 %v1355_v26, %v61_v25  ;;  %v64_v37 = vshrl.u32 %v1356_v28, %v61_v25  ;;  %v67_v38 = vshrl.u32 %v1357_v30, %v61_v25  ;;  %v70_v39 = vshrl.u32 %v1358_v32, %v61_v25 }
  0x36   :  { %v73_v40 = vshrl.u32 %v1359_v34, %v61_v25  ;;  %v76_v42 = vshrl.u32 %v1360_v41, %v61_v25  ;;  %vm79_vm4 = vcmp.lt.s32.totalorder %v59_v24, 2  ;;  %vm80_vm5 = vcmp.lt.s32.totalorder %v59_v24, 3 }
  0x37   :  { %v65_v44 = vor.u32 %v64_v37, %v63_v27  ;;  %v68_v45 = vor.u32 %v67_v38, %v66_v29  ;;  %v71_v46 = vor.u32 %v70_v39, %v69_v31 }
  0x38   :  { %v74_v47 = vor.u32 %v73_v40, %v72_v33  ;;  %v77_v48 = vor.u32 %v76_v42, %v75_v35 }
  0x39   :  { %v82_v49 = vsel %vm78_vm2, %v62_v36, %v65_v44  ;;  %v83_v50 = vsel %vm81_vm3, %v71_v46, 2102212464  ;;  %v86_v51 = vsel %vm78_vm2, %v65_v44, %v68_v45  ;;  %v90_v52 = vsel %vm78_vm2, %v68_v45, %v71_v46 }
  0x3a   :  { %v84_v53 = vsel %vm80_vm5, %v68_v45, %v83_v50  ;;  %v87_v54 = vsel %vm81_vm3, %v74_v47, 920167782  ;;  %v91_v55 = vsel %vm81_vm3, %v77_v48, 1326507024  ;;  %vm280_vm2 = vcmask 1043456  }
  0x3b   :  { %v88_v56 = vsel %vm80_vm5, %v71_v46, %v87_v54  ;;  %v92_v57 = vsel %vm80_vm5, %v74_v47, %v91_v55  ;;  %v85_v58 = vsel %vm79_vm4, %v82_v49, %v84_v53  ;;  %vm1362_vm3 = vmmov 0  }
  0x3c   :  { %v89_v59 = vsel %vm79_vm4, %v86_v51, %v88_v56  ;;  %v93_v60 = vsel %vm79_vm4, %v90_v52, %v92_v57  ;;  %v101_v1 = vmul.u32 %v94_v43, %v85_v58  ;;  %v1247_v56 = vld [vmem:[#allocation2 + $0x18] sm:$0xff]   ;;  %v1248_v57 = vld [vmem:[#allocation2 + $0x8] sm:$0xff]   ;;  %v1363_v58 = vmov 1  }
  0x3d   :  { %v1431_v61 = vmul.u32.u64.low %v94_v43, %v93_v60  ;;  %v1432_v62 = vmul.u32.u64.high %v94_v43, %v93_v60, %v1431_v61  ;;  %v1434_v63 = vmul.u32.u64.low %v94_v43, %v89_v59  ;;  %v1435_v0 = vmul.u32.u64.high %v94_v43, %v89_v59, %v1434_v63  ;;  %1236 = vset.pattern.permute.xlu0 %v1363_v58  ;;  %1237 = vset.pattern.permute.xlu1 %v1363_v58 }
  0x3e   :  { %481 = vperm.xlu0 %1236, %v1412_v10   ;;  %486 = vperm.xlu1 %1237, %v1417_v11  }
  0x3f   :  { %vm103_vm6 = vc.u32 %v1432_v62, %v1434_v63  ;;  %v104_v2 = vadd.s32 1, %v1435_v0  ;;  %v102_v19 = vadd.s32 %v1434_v63, %v1432_v62 }
  0x41   :  { %v105_v3 = vsel %vm103_vm6, %v104_v2, %v1435_v0 }
  0x42   :  { %v106_v4 = vadd.s32 %v105_v3, %v101_v1 }
  0x44   :  { %v107_v5 = vadd.s32 536870912, %v106_v4 }
  0x46   :  { %v108_v6 = vshrl.u32 %v107_v5, 30 }
  0x48   :  { %v109_v7 = vshll.u32 %v108_v6, 30  ;;  %v132_v32 = vsub.s32 4, %v108_v6 }
  0x4a   :  { %v110_v12 = vsub.s32 %v106_v4, %v109_v7  ;;  %v133_v35 = vsel %vm48_vm8, %v132_v32, %v108_v6 }
  0x4b   :  { %v135_v37 = vsel %vm47_vm9, 0, %v133_v35 }
  0x4c   :  { %v112_v13 = vsub.s32 0, %v110_v12  ;;  %v139_v38 = vadd.s32 3, %v135_v37  ;;  %v244_v39 = vand.u32 3, %v135_v37 }
  0x4e   :  { %v1077_v15 = vmin.u32 %v112_v13, %v110_v12  ;;  %v140_v40 = vand.u32 3, %v139_v38  ;;  %vm249_vm10 = vcmp.eq.s32.totalorder %v244_v39, 2  ;;  %vm246_vm12 = vcmp.eq.s32.totalorder %v244_v39, 0 }
  0x4f   :  { %vm245_vm14 = vcmp.lt.s32.totalorder %v244_v39, 2 }
  0x50   :  { %v114_v16 = vclz %v1077_v15  ;;  %vm145_vm11 = vcmp.eq.s32.totalorder %v140_v40, 2  ;;  %vm142_vm13 = vcmp.eq.s32.totalorder %v140_v40, 0  ;;  %vm141_vm15 = vcmp.lt.s32.totalorder %v140_v40, 2 }
  0x52   :  { %v1078_v18 = vadd.s32 4294967294, %v114_v16 }
  0x54   :  { %vm1079_vm7 = vcmp.lt.s32.totalorder %v1078_v18, 0 }
  0x55   :  { %v117_v20 = vsel %vm1079_vm7, 0, %v1078_v18  ;;  %vm494_vm7 = vcmask 261120  }
  0x56   :  { %v118_v21 = vsub.s32 32, %v117_v20  ;;  %v119_v22 = vshll.u32 %v110_v12, %v117_v20  ;;  %v122_v23 = vsub.s32 4294967266, %v117_v20 }
  0x58   :  { %v120_v24 = vshrl.u32 %v102_v19, %v118_v21  ;;  %v123_v25 = vadd.s32 127, %v122_v23 }
  0x5a   :  { %v121_v26 = vor.u32 %v120_v24, %v119_v22  ;;  %v124_v27 = vshll.u32 %v123_v25, 23 }
  0x5c   :  { %v125_v28 = vor.u32 4788187, %v124_v27  ;;  %v128_v29 = vcvt.s32.f32 %v121_v26 }
  0x5e   :  { %v126_v30 = vand.u32 2147483647, %v125_v28 }
  0x60   :  { %v129_v31 = vmul.f32 %v128_v29, %v126_v30 }
  0x62   :  { %v130_v33 = vxor.u32 2147483648, %v129_v31 }
  0x64   :  { %v131_v34 = vsel %vm48_vm8, %v130_v33, %v129_v31  ;;  %vm638_vm8 = vcmask 1045504  }
  0x65   :  { %v134_v36 = vsel %vm47_vm9, %v1425_v14, %v131_v34  ;;  %v1361_v14 = vmov 0.0   ;;  %vm631_vm9 = vcmask 97280  }
  0x66   :  { %1261 = vcosq.f32 %v134_v36 }
  0x67   :  { %1263 = vsinq.f32 %v134_v36 }
  0x73   :  { %v1262_v41 = vpop.eup %1261 }
  0x74   :  { %v1264_v42 = vpop.eup %1263  ;;  %v146_v43 = vxor.u32 2147483648, %v1262_v41 }
  0x75   :  { %v143_v44 = vxor.u32 2147483648, %v1264_v42 }
  0x76   :  { %v251_v17 = vsel %vm249_vm10, %v146_v43, %v1264_v42  ;;  %v147_v45 = vsel %vm145_vm11, %v146_v43, %v1264_v42  ;;  %vm560_vm10 = vcmask 130048  }
  0x77   :  { %v248_v46 = vsel %vm246_vm12, %v1262_v41, %v143_v44  ;;  %v144_v47 = vsel %vm142_vm13, %v1262_v41, %v143_v44 }
  0x78   :  { %v252_v48 = vsel %vm245_vm14, %v248_v46, %v251_v17  ;;  %v148_v49 = vsel %vm141_vm15, %v144_v47, %v147_v45 }
  0x79   :  { %v253_v50 = vsel %vm138_vm1, nan, %v252_v48  ;;  %v149_v51 = vsel %vm138_vm1, nan, %v148_v49 }
  0x7a   :  { %v254_v52 = vpack.c.bf16 %v253_v50, %v253_v50  ;;  %v150_v53 = vpack.c.bf16 %v149_v51, %v149_v51 }
  0x7c   :  { %1210 = vmatprep.subr.msk.bf16.mxu0 %vm280_vm2, %v254_v52  ;;  %1211 = vmatprep.subr.msk.bf16.mxu1 %vm280_vm2, %v150_v53  ;;  %v282_v54 = vsel %vm280_vm2, %v254_v52, 0  ;;  %v350_v55 = vsel %vm280_vm2, %v150_v53, 0 }
  0x7d   :  { %1155 = vmatpush3.bf16.msra.mxu0 %v282_v54  ;;  %1161 = vmatpush3.bf16.msra.mxu1 %v350_v55 }
  0x7e   :  { %1166 = vmatprep.subr.bf16.mxu0 %v1361_v14 }
  0x80   :  { %1157 = vmatmul.mubr.msk.bf16.vlgmr.msra.gmra.mxu0 %vm273_vm0, %v1247_v56  ;;  %1163 = vmatmul.mubr.msk.bf16.vlgmr.msra.gmra.mxu1 %vm273_vm0, %v1248_v57 }
  0x81   :  { %1170 = vmatprep.mubr.msk.bf16.mxu0 %vm1362_vm3, %v1361_v14 }
  0x8b   :  { %v418_v59 = vpop.permute.xlu0 %417  ;;  %v408_v2 = vpop.permute.xlu1 %407 }
  0x8f   :  { %v423_v7 = vpop.permute.xlu0 %422  ;;  %v413_v22 = vpop.permute.xlu1 %412 }
 0x140   :  { %v1158_v60 = vpop.f32.mrf.mxu0  ;;  %v1164_v61 = vpop.f32.mrf.mxu1 }
 0x141   :  { %v395_v62 = vadd.f32 %v1164_v61, %v1158_v60 }
 0x142   :  { %v318_v63 = vpop.f32.mrf.mxu0  ;;  %v386_v0 = vpop.f32.mrf.mxu1 }
 0x143   :  { %v427_v1 = vadd.f32 %v418_v59, %v395_v62  ;;  %v387_v3 = vadd.f32 %v386_v0, %v318_v63  ;;  %v1249_v62 = vld [vmem:[#allocation2 + $0x20] sm:$0xff]  }
 0x144   :  { %v1159_v4 = vpop.f32.mrf.mxu0  ;;  %v1165_v5 = vpop.f32.mrf.mxu1  ;;  %v1250_v63 = vld [vmem:[%s1487_s0] sm:$0x3f]  }
 0x145   :  { %v433_v6 = vmul.f32 1.442695, %v427_v1  ;;  %v425_v12 = vadd.f32 %v408_v2, %v387_v3  ;;  %v398_v13 = vadd.f32 %v1165_v5, %v1159_v4  ;;  %vm463_vm0 = vcmp.gt.f32.partialorder %v427_v1, 20.0  ;;  %v1252_v2 = vld [vmem:[#allocation2 + $0x30] sm:$0xff]   ;;  %v1253_v3 = vld [vmem:[#allocation2 + $0x38] sm:$0xff]  }
 0x146   :  { %v321_v15 = vpop.f32.mrf.mxu0  ;;  %v389_v16 = vpop.f32.mrf.mxu1  ;;  %v640_v0 = vsel %vm638_vm8, %v1250_v63, 0  ;;  %1176 = vmatprep.mubr.msk.bf16.mxu1 %vm560_vm10, %v1253_v3  ;;  %v1364_v4 = vmov 2  }
 0x147   :  { %1265 = vpow2.f32 %v433_v6  ;;  %v429_v18 = vmul.f32 1.442695, %v425_v12  ;;  %v428_v19 = vadd.f32 %v423_v7, %v398_v13  ;;  %v390_v20 = vadd.f32 %v389_v16, %v321_v15  ;;  %1238 = vset.pattern.permute.xlu1 %v1364_v4  ;;  %1239 = vset.pattern.permute.xlu0 %v1364_v4  ;;  %v482_v6 = vpop.permute.xlu0 %481 }
 0x148   :  { %vm461_vm6 = vcmp.gt.f32.partialorder %v425_v12, 20.0  ;;  %700 = vperm.xlu1 %1238, %v1401_v8   ;;  %704 = vperm.xlu0 %1239, %v1406_v9  }
 0x149   :  { %1267 = vpow2.f32 %v429_v18  ;;  %v435_v21 = vmul.f32 1.442695, %v428_v19  ;;  %v426_v23 = vadd.f32 %v413_v22, %v390_v20  ;;  %vm464_vm4 = vcmp.gt.f32.partialorder %v428_v19, 20.0  ;;  %v1254_v20 = vld [vmem:[#allocation2 + $0x40] sm:$0xff]  }
 0x14a   :  { %v1365_v22 = vmov 3  }
 0x14b   :  { %1269 = vpow2.f32 %v435_v21  ;;  %v431_v24 = vmul.f32 1.442695, %v426_v23  ;;  %vm462_vm5 = vcmp.gt.f32.partialorder %v426_v23, 20.0  ;;  %v1255_v21 = vld [vmem:[#allocation2 + $0x48] sm:$0xff]  }
 0x14c   :  { %692 = vperm.xlu1 %1238, %v1412_v10   ;;  %1240 = vset.pattern.permute.xlu0 %v1365_v22 }
 0x14d   :  { %1271 = vpow2.f32 %v431_v24  ;;  %770 = vperm.xlu0 %1240, %v1401_v8  }
 0x150   :  { %696 = vperm.xlu1 %1238, %v1417_v11  }
 0x151   :  { %766 = vperm.xlu0 %1240, %v1417_v11  }
 0x154   :  { %v1266_v25 = vpop.eup %1265  ;;  %1241 = vset.pattern.permute.xlu1 %v1365_v22 }
 0x155   :  { %v439_v26 = vadd.f32 1.0, %v1266_v25  ;;  %774 = vperm.xlu1 %1241, %v1406_v9  }
 0x156   :  { %v1268_v27 = vpop.eup %1267 }
 0x157   :  { %v443_v28 = vmul.f32 %v439_v26, %v439_v26  ;;  %v437_v29 = vadd.f32 1.0, %v1268_v27 }
 0x158   :  { %v1270_v30 = vpop.eup %1269 }
 0x159   :  { %v451_v31 = vadd.f32 1.0, %v443_v28  ;;  %v441_v32 = vmul.f32 %v437_v29, %v437_v29  ;;  %v440_v33 = vadd.f32 1.0, %v1270_v30  ;;  %v1094_v41 = vadd.f32 -1.0, %v443_v28  ;;  %762 = vperm.xlu1 %1241, %v1412_v10  }
 0x15a   :  { %v1272_v34 = vpop.eup %1271 }
 0x15b   :  { %1273 = vrcp.f32 %v451_v31  ;;  %v449_v35 = vadd.f32 1.0, %v441_v32  ;;  %v444_v36 = vmul.f32 %v440_v33, %v440_v33  ;;  %v438_v37 = vadd.f32 1.0, %v1272_v34 }
 0x15c   :  { %v1092_v17 = vadd.f32 -1.0, %v441_v32 }
 0x15d   :  { %1275 = vrcp.f32 %v449_v35  ;;  %v452_v38 = vadd.f32 1.0, %v444_v36  ;;  %v442_v39 = vmul.f32 %v438_v37, %v438_v37  ;;  %v1095_v45 = vadd.f32 -1.0, %v444_v36 }
 0x15f   :  { %1277 = vrcp.f32 %v452_v38  ;;  %v450_v40 = vadd.f32 1.0, %v442_v39  ;;  %v1093_v50 = vadd.f32 -1.0, %v442_v39 }
 0x161   :  { %1279 = vrcp.f32 %v450_v40 }
 0x168   :  { %v1274_v42 = vpop.eup %1273 }
 0x169   :  { %v459_v43 = vmul.f32 %v1274_v42, %v1094_v41 }
 0x16a   :  { %v1276_v44 = vpop.eup %1275 }
 0x16b   :  { %v467_v47 = vmul.f32 %v459_v43, %v427_v1  ;;  %v457_v48 = vmul.f32 %v1276_v44, %v1092_v17 }
 0x16c   :  { %v1278_v46 = vpop.eup %1277 }
 0x16d   :  { %v460_v49 = vmul.f32 %v1278_v46, %v1095_v45  ;;  %v465_v54 = vmul.f32 %v457_v48, %v425_v12  ;;  %v471_v55 = vsel %vm463_vm0, %v427_v1, %v467_v47  ;;  %v1251_v1 = vld [vmem:[#allocation2 + $0x28] sm:$0xff]  }
 0x16e   :  { %v1280_v51 = vpop.eup %1279 }
 0x16f   :  { %v468_v52 = vmul.f32 %v460_v49, %v428_v19  ;;  %v458_v53 = vmul.f32 %v1280_v51, %v1093_v50  ;;  %v469_v60 = vsel %vm461_vm6, %v425_v12, %v465_v54  ;;  %v487_v12 = vpop.permute.xlu1 %486 }
 0x171   :  { %v472_v56 = vsel %vm464_vm4, %v428_v19, %v468_v52  ;;  %v466_v57 = vmul.f32 %v458_v53, %v426_v23 }
 0x172   :  { %v476_v58 = vpack.c.bf16 %v472_v56, %v471_v55 }
 0x173   :  { %v470_v59 = vsel %vm462_vm5, %v426_v23, %v466_v57 }
 0x174   :  { %1167 = vmatpush3.bf16.msra.mxu0 %v476_v58  ;;  %v475_v61 = vpack.c.bf16 %v470_v59, %v469_v60 }
 0x175   :  { %1168 = vmatprep.subr.bf16.mxu0 %v1361_v14 }
 0x178   :  { %1169 = vmatpush3.bf16.msra.mxu0 %v475_v61 }
 0x179   :  { %1212 = vmatprep.subr.msk.bf16.mxu0 %vm638_vm8, %v1250_v63 }
 0x17b   :  { %1171 = vmatmul.mubr.msk.bf16.vlgmr.msra.gmra.mxu0 %vm494_vm7, %v1249_v62 }
 0x17c   :  { %1181 = vmatpush3.bf16.msra.mxu0 %v640_v0  ;;  %1182 = vmatprep.mubr.msk.bf16.mxu0 %vm631_vm9, %v1251_v1 }
 0x183   :  { %1183 = vmatmul.mubr.msk.bf16.vlgmr.msra.gmra.mxu0 %vm631_vm9, %v1252_v2 }
 0x1c3   :  { %v701_v24 = vpop.permute.xlu1 %700  ;;  %v705_v34 = vpop.permute.xlu0 %704 }
 0x1c7   :  { %v693_v28 = vpop.permute.xlu1 %692 }
 0x1cb   :  { %v697_v43 = vpop.permute.xlu1 %696 }
 0x23b   :  { %v532_v5 = vpop.f32.mrf.mxu0 }
 0x23c   :  { %v533_v15 = vadd.f32 %v532_v5, %v482_v6 }
 0x23d   :  { %v1172_v7 = vpop.f32.mrf.mxu0 }
 0x23f   :  { %v535_v13 = vpop.f32.mrf.mxu0 }
 0x240   :  { %v536_v16 = vadd.f32 %v535_v13, %v487_v12 }
 0x241   :  { %v1173_v18 = vpop.f32.mrf.mxu0 }
 0x242   :  { %v539_v19 = vpack.c.bf16 %v536_v16, %v533_v15 }
 0x243   :  { %v1184_v23 = vpop.f32.mrf.mxu0 }
 0x244   :  { %1174 = vmatprep.subr.bf16.mxu1 %v539_v19 }
 0x245   :  { %1175 = vmatpush3.bf16.msra.mxu1 %v539_v19  ;;  %v676_v25 = vpop.f32.mrf.mxu0 }
 0x247   :  { %v1185_v30 = vpop.f32.mrf.mxu0 }
 0x248   :  { %1177 = vmatmul.mubr.msk.bf16.vlgmr.msra.gmra.mxu1 %vm560_vm10, %v1254_v20 }
 0x249   :  { %1190 = vmatprep.mubr.msk.bf16.mxu1 %vm494_vm7, %v1255_v21  ;;  %v679_v38 = vpop.f32.mrf.mxu0 }
 0x308   :  { %v1178_v26 = vpop.f32.mrf.mxu1 }
 0x309   :  { %v685_v27 = vadd.f32 %v1184_v23, %v1178_v26  ;;  %v1256_v26 = vld [vmem:[#allocation2 + $0x50] sm:$0xff]  }
 0x30a   :  { %v601_v29 = vpop.f32.mrf.mxu1 }
 0x30b   :  { %v709_v31 = vadd.f32 %v701_v24, %v685_v27  ;;  %v677_v32 = vadd.f32 %v676_v25, %v601_v29  ;;  %v1257_v27 = vld [vmem:[#allocation2 + $0x58] sm:$0xff]   ;;  %v775_v29 = vpop.permute.xlu1 %774 }
 0x30c   :  { %v1179_v33 = vpop.f32.mrf.mxu1  ;;  %1198 = vmatprep.mubr.msk.bf16.mxu0 %vm494_vm7, %v1257_v27 }
 0x30d   :  { %v715_v35 = vmul.f32 1.442695, %v709_v31  ;;  %v707_v36 = vadd.f32 %v693_v28, %v677_v32  ;;  %v688_v37 = vadd.f32 %v1185_v30, %v1179_v33  ;;  %vm745_vm11 = vcmp.gt.f32.partialorder %v709_v31, 20.0  ;;  %v771_v30 = vpop.permute.xlu0 %770 }
 0x30e   :  { %v604_v39 = vpop.f32.mrf.mxu1  ;;  %v1366_v28 = vmov 4  }
 0x30f   :  { %1281 = vpow2.f32 %v715_v35  ;;  %v711_v40 = vmul.f32 1.442695, %v707_v36  ;;  %v710_v41 = vadd.f32 %v705_v34, %v688_v37  ;;  %v680_v42 = vadd.f32 %v679_v38, %v604_v39  ;;  %1242 = vset.pattern.permute.xlu1 %v1366_v28  ;;  %1243 = vset.pattern.permute.xlu0 %v1366_v28  ;;  %v763_v32 = vpop.permute.xlu1 %762 }
 0x310   :  { %vm743_vm13 = vcmp.gt.f32.partialorder %v707_v36, 20.0  ;;  %901 = vperm.xlu1 %1242, %v1401_v8   ;;  %905 = vperm.xlu0 %1243, %v1406_v9  }
 0x311   :  { %1283 = vpow2.f32 %v711_v40  ;;  %v717_v44 = vmul.f32 1.442695, %v710_v41  ;;  %v708_v17 = vadd.f32 %v697_v43, %v680_v42  ;;  %vm746_vm12 = vcmp.gt.f32.partialorder %v710_v41, 20.0  ;;  %v767_v40 = vpop.permute.xlu0 %766 }
 0x313   :  { %1285 = vpow2.f32 %v717_v44  ;;  %v713_v45 = vmul.f32 1.442695, %v708_v17  ;;  %vm744_vm14 = vcmp.gt.f32.partialorder %v708_v17, 20.0 }
 0x314   :  { %893 = vperm.xlu1 %1242, %v1412_v10  }
 0x315   :  { %1287 = vpow2.f32 %v713_v45 }
 0x318   :  { %897 = vperm.xlu1 %1242, %v1417_v11  }
 0x31c   :  { %v1282_v46 = vpop.eup %1281 }
 0x31d   :  { %v721_v47 = vadd.f32 1.0, %v1282_v46 }
 0x31e   :  { %v1284_v48 = vpop.eup %1283 }
 0x31f   :  { %v725_v49 = vmul.f32 %v721_v47, %v721_v47  ;;  %v719_v50 = vadd.f32 1.0, %v1284_v48 }
 0x320   :  { %v1286_v51 = vpop.eup %1285 }
 0x321   :  { %v733_v52 = vadd.f32 1.0, %v725_v49  ;;  %v723_v53 = vmul.f32 %v719_v50, %v719_v50  ;;  %v722_v54 = vadd.f32 1.0, %v1286_v51  ;;  %v1109_v62 = vadd.f32 -1.0, %v725_v49 }
 0x322   :  { %v1288_v55 = vpop.eup %1287 }
 0x323   :  { %1289 = vrcp.f32 %v733_v52  ;;  %v731_v56 = vadd.f32 1.0, %v723_v53  ;;  %v726_v57 = vmul.f32 %v722_v54, %v722_v54  ;;  %v720_v58 = vadd.f32 1.0, %v1288_v55 }
 0x324   :  { %v1107_v1 = vadd.f32 -1.0, %v723_v53 }
 0x325   :  { %1291 = vrcp.f32 %v731_v56  ;;  %v734_v59 = vadd.f32 1.0, %v726_v57  ;;  %v724_v60 = vmul.f32 %v720_v58, %v720_v58  ;;  %v1110_v3 = vadd.f32 -1.0, %v726_v57 }
 0x327   :  { %1293 = vrcp.f32 %v734_v59  ;;  %v732_v61 = vadd.f32 1.0, %v724_v60  ;;  %v1108_v12 = vadd.f32 -1.0, %v724_v60 }
 0x329   :  { %1295 = vrcp.f32 %v732_v61 }
 0x330   :  { %v1290_v63 = vpop.eup %1289 }
 0x331   :  { %v741_v0 = vmul.f32 %v1290_v63, %v1109_v62 }
 0x332   :  { %v1292_v2 = vpop.eup %1291 }
 0x333   :  { %v739_v4 = vmul.f32 %v1292_v2, %v1107_v1  ;;  %v749_v7 = vmul.f32 %v741_v0, %v709_v31 }
 0x334   :  { %v1294_v5 = vpop.eup %1293 }
 0x335   :  { %v742_v6 = vmul.f32 %v1294_v5, %v1110_v3  ;;  %v747_v18 = vmul.f32 %v739_v4, %v707_v36  ;;  %v753_v19 = vsel %vm745_vm11, %v709_v31, %v749_v7 }
 0x336   :  { %v1296_v13 = vpop.eup %1295 }
 0x337   :  { %v750_v15 = vmul.f32 %v742_v6, %v710_v41  ;;  %v740_v16 = vmul.f32 %v1296_v13, %v1108_v12  ;;  %v751_v23 = vsel %vm743_vm13, %v707_v36, %v747_v18 }
 0x339   :  { %v754_v20 = vsel %vm746_vm12, %v710_v41, %v750_v15  ;;  %v748_v21 = vmul.f32 %v740_v16, %v708_v17 }
 0x33a   :  { %v760_v22 = vpack.c.bf16 %v754_v20, %v753_v19  ;;  %v1258_v20 = vld [vmem:[#allocation2 + $0x60] sm:$0xff]  }
 0x33b   :  { %v752_v24 = vsel %vm744_vm14, %v708_v17, %v748_v21  ;;  %v1020_v21 = vld [vmem:[%s1490_s3] sm:$0xf] }
 0x33c   :  { %1186 = vmatprep.subr.bf16.mxu1 %v760_v22  ;;  %v759_v25 = vpack.c.bf16 %v752_v24, %v751_v23 }
 0x33d   :  { %1187 = vmatpush3.bf16.msra.mxu1 %v760_v22  ;;  %v1367_v22 = vmov 5  }
 0x33e   :  { %1188 = vmatprep.subr.bf16.mxu1 %v759_v25  ;;  %1244 = vset.pattern.permute.xlu0 %v1367_v22 }
 0x33f   :  { %1023 = vperm.xlu0 %1244, %v1020_v21  }
 0x341   :  { %1189 = vmatpush3.bf16.msra.mxu1 %v759_v25 }
 0x342   :  { %1202 = vmatprep.subr.bf16.mxu1 %v1361_v14 }
 0x344   :  { %1191 = vmatmul.mubr.msk.bf16.vlgmr.msra.gmra.mxu1 %vm494_vm7, %v1256_v26 }
 0x345   :  { %1206 = vmatprep.mubr.msk.bf16.mxu1 %vm1362_vm3, %v1361_v14 }
 0x38b   :  { %v902_v23 = vpop.permute.xlu1 %901  ;;  %v906_v28 = vpop.permute.xlu0 %905 }
 0x38f   :  { %v894_v24 = vpop.permute.xlu1 %893 }
 0x404   :  { %v1192_v31 = vpop.f32.mrf.mxu1 }
 0x405   :  { %v836_v33 = vadd.f32 %v1192_v31, %v771_v30 }
 0x406   :  { %v827_v34 = vpop.f32.mrf.mxu1 }
 0x407   :  { %v846_v35 = vmul.f32 1.442695, %v836_v33  ;;  %v828_v36 = vadd.f32 %v827_v34, %v763_v32  ;;  %vm876_vm15 = vcmp.gt.f32.partialorder %v836_v33, 20.0  ;;  %v898_v34 = vpop.permute.xlu1 %897 }
 0x408   :  { %v1193_v37 = vpop.f32.mrf.mxu1 }
 0x409   :  { %1297 = vpow2.f32 %v846_v35  ;;  %v842_v38 = vmul.f32 1.442695, %v828_v36  ;;  %v839_v39 = vadd.f32 %v1193_v37, %v775_v29  ;;  %vm874_vm2 = vcmp.gt.f32.partialorder %v828_v36, 20.0 }
 0x40a   :  { %v830_v8 = vpop.f32.mrf.mxu1 }
 0x40b   :  { %1299 = vpow2.f32 %v842_v38  ;;  %v848_v9 = vmul.f32 1.442695, %v839_v39  ;;  %v831_v41 = vadd.f32 %v830_v8, %v767_v40  ;;  %vm877_vm1 = vcmp.gt.f32.partialorder %v839_v39, 20.0 }
 0x40d   :  { %1301 = vpow2.f32 %v848_v9  ;;  %v844_v10 = vmul.f32 1.442695, %v831_v41  ;;  %vm875_vm3 = vcmp.gt.f32.partialorder %v831_v41, 20.0 }
 0x40f   :  { %1303 = vpow2.f32 %v844_v10 }
 0x416   :  { %v1298_v11 = vpop.eup %1297 }
 0x417   :  { %v852_v42 = vadd.f32 1.0, %v1298_v11 }
 0x418   :  { %v1300_v43 = vpop.eup %1299 }
 0x419   :  { %v856_v44 = vmul.f32 %v852_v42, %v852_v42  ;;  %v850_v17 = vadd.f32 1.0, %v1300_v43 }
 0x41a   :  { %v1302_v45 = vpop.eup %1301 }
 0x41b   :  { %v864_v46 = vadd.f32 1.0, %v856_v44  ;;  %v854_v47 = vmul.f32 %v850_v17, %v850_v17  ;;  %v853_v48 = vadd.f32 1.0, %v1302_v45  ;;  %v1117_v56 = vadd.f32 -1.0, %v856_v44 }
 0x41c   :  { %v1304_v49 = vpop.eup %1303 }
 0x41d   :  { %1305 = vrcp.f32 %v864_v46  ;;  %v862_v50 = vadd.f32 1.0, %v854_v47  ;;  %v857_v51 = vmul.f32 %v853_v48, %v853_v48  ;;  %v851_v52 = vadd.f32 1.0, %v1304_v49 }
 0x41e   :  { %v1115_v60 = vadd.f32 -1.0, %v854_v47 }
 0x41f   :  { %1307 = vrcp.f32 %v862_v50  ;;  %v865_v53 = vadd.f32 1.0, %v857_v51  ;;  %v855_v54 = vmul.f32 %v851_v52, %v851_v52  ;;  %v1118_v61 = vadd.f32 -1.0, %v857_v51 }
 0x421   :  { %1309 = vrcp.f32 %v865_v53  ;;  %v863_v55 = vadd.f32 1.0, %v855_v54  ;;  %v1116_v2 = vadd.f32 -1.0, %v855_v54 }
 0x423   :  { %1311 = vrcp.f32 %v863_v55 }
 0x42a   :  { %v1306_v57 = vpop.eup %1305 }
 0x42b   :  { %v872_v58 = vmul.f32 %v1306_v57, %v1117_v56 }
 0x42c   :  { %v1308_v59 = vpop.eup %1307 }
 0x42d   :  { %v870_v63 = vmul.f32 %v1308_v59, %v1115_v60  ;;  %v880_v0 = vmul.f32 %v872_v58, %v836_v33 }
 0x42e   :  { %v1310_v62 = vpop.eup %1309 }
 0x42f   :  { %v873_v1 = vmul.f32 %v1310_v62, %v1118_v61  ;;  %v878_v5 = vmul.f32 %v870_v63, %v828_v36  ;;  %v884_v7 = vsel %vm876_vm15, %v836_v33, %v880_v0 }
 0x430   :  { %v1312_v3 = vpop.eup %1311 }
 0x431   :  { %v881_v4 = vmul.f32 %v873_v1, %v839_v39  ;;  %v871_v6 = vmul.f32 %v1312_v3, %v1116_v2  ;;  %v882_v16 = vsel %vm874_vm2, %v828_v36, %v878_v5 }
 0x433   :  { %v885_v12 = vsel %vm877_vm1, %v839_v39, %v881_v4  ;;  %v879_v13 = vmul.f32 %v871_v6, %v831_v41 }
 0x434   :  { %v891_v15 = vpack.c.bf16 %v885_v12, %v884_v7  ;;  %v1017_v12 = vld [vmem:[#allocation2 + $0x68] sm:$0x3] }
 0x435   :  { %v883_v18 = vsel %vm875_vm3, %v831_v41, %v879_v13  ;;  %v1024_v13 = vpop.permute.xlu0 %1023 }
 0x436   :  { %1194 = vmatprep.subr.bf16.mxu0 %v891_v15  ;;  %v890_v19 = vpack.c.bf16 %v883_v18, %v882_v16 }
 0x437   :  { %1195 = vmatpush3.bf16.msra.mxu0 %v891_v15 }
 0x438   :  { %1196 = vmatprep.subr.bf16.mxu0 %v890_v19 }
 0x43b   :  { %1197 = vmatpush3.bf16.msra.mxu0 %v890_v19 }
 0x43e   :  { %1199 = vmatmul.mubr.msk.bf16.vlgmr.msra.gmra.mxu0 %vm494_vm7, %v1258_v20 }
 0x4fe   :  { %v1200_v25 = vpop.f32.mrf.mxu0 }
 0x4ff   :  { %v967_v26 = vadd.f32 %v1200_v25, %v902_v23 }
 0x500   :  { %v958_v27 = vpop.f32.mrf.mxu0 }
 0x501   :  { %v977_v29 = vmul.f32 1.442695, %v967_v26  ;;  %v959_v30 = vadd.f32 %v958_v27, %v894_v24  ;;  %vm1007_vm0 = vcmp.gt.f32.partialorder %v967_v26, 20.0 }
 0x502   :  { %v1201_v31 = vpop.f32.mrf.mxu0 }
 0x503   :  { %1313 = vpow2.f32 %v977_v29  ;;  %v973_v32 = vmul.f32 1.442695, %v959_v30  ;;  %v970_v33 = vadd.f32 %v1201_v31, %v906_v28  ;;  %vm1005_vm6 = vcmp.gt.f32.partialorder %v959_v30, 20.0 }
 0x504   :  { %v961_v35 = vpop.f32.mrf.mxu0 }
 0x505   :  { %1315 = vpow2.f32 %v973_v32  ;;  %v979_v36 = vmul.f32 1.442695, %v970_v33  ;;  %v962_v37 = vadd.f32 %v961_v35, %v898_v34  ;;  %vm1008_vm4 = vcmp.gt.f32.partialorder %v970_v33, 20.0 }
 0x507   :  { %1317 = vpow2.f32 %v979_v36  ;;  %v975_v38 = vmul.f32 1.442695, %v962_v37  ;;  %vm1006_vm5 = vcmp.gt.f32.partialorder %v962_v37, 20.0 }
 0x509   :  { %1319 = vpow2.f32 %v975_v38 }
 0x510   :  { %v1314_v39 = vpop.eup %1313 }
 0x511   :  { %v983_v40 = vadd.f32 1.0, %v1314_v39 }
 0x512   :  { %v1316_v8 = vpop.eup %1315 }
 0x513   :  { %v987_v9 = vmul.f32 %v983_v40, %v983_v40  ;;  %v981_v41 = vadd.f32 1.0, %v1316_v8 }
 0x514   :  { %v1318_v10 = vpop.eup %1317 }
 0x515   :  { %v995_v11 = vadd.f32 1.0, %v987_v9  ;;  %v985_v42 = vmul.f32 %v981_v41, %v981_v41  ;;  %v984_v43 = vadd.f32 1.0, %v1318_v10  ;;  %v1125_v50 = vadd.f32 -1.0, %v987_v9 }
 0x516   :  { %v1320_v44 = vpop.eup %1319 }
 0x517   :  { %1321 = vrcp.f32 %v995_v11  ;;  %v993_v17 = vadd.f32 1.0, %v985_v42  ;;  %v988_v45 = vmul.f32 %v984_v43, %v984_v43  ;;  %v982_v46 = vadd.f32 1.0, %v1320_v44 }
 0x518   :  { %v1123_v54 = vadd.f32 -1.0, %v985_v42 }
 0x519   :  { %1323 = vrcp.f32 %v993_v17  ;;  %v996_v47 = vadd.f32 1.0, %v988_v45  ;;  %v986_v48 = vmul.f32 %v982_v46, %v982_v46  ;;  %v1126_v55 = vadd.f32 -1.0, %v988_v45 }
 0x51b   :  { %1325 = vrcp.f32 %v996_v47  ;;  %v994_v49 = vadd.f32 1.0, %v986_v48  ;;  %v1124_v60 = vadd.f32 -1.0, %v986_v48 }
 0x51d   :  { %1327 = vrcp.f32 %v994_v49 }
 0x524   :  { %v1322_v51 = vpop.eup %1321 }
 0x525   :  { %v1003_v52 = vmul.f32 %v1322_v51, %v1125_v50 }
 0x526   :  { %v1324_v53 = vpop.eup %1323 }
 0x527   :  { %v1011_v57 = vmul.f32 %v1003_v52, %v967_v26  ;;  %v1001_v58 = vmul.f32 %v1324_v53, %v1123_v54 }
 0x528   :  { %v1326_v56 = vpop.eup %1325 }
 0x529   :  { %v1004_v59 = vmul.f32 %v1326_v56, %v1126_v55  ;;  %v1009_v0 = vmul.f32 %v1001_v58, %v959_v30  ;;  %v1015_v1 = vsel %vm1007_vm0, %v967_v26, %v1011_v57 }
 0x52a   :  { %v1328_v61 = vpop.eup %1327 }
 0x52b   :  { %v1012_v62 = vmul.f32 %v1004_v59, %v970_v33  ;;  %v1002_v63 = vmul.f32 %v1328_v61, %v1124_v60  ;;  %v1013_v6 = vsel %vm1005_vm6, %v959_v30, %v1009_v0 }
 0x52d   :  { %v1016_v2 = vsel %vm1008_vm4, %v970_v33, %v1012_v62  ;;  %v1010_v3 = vmul.f32 %v1002_v63, %v962_v37 }
 0x52e   :  { %v1019_v4 = vpack.c.bf16 %v1016_v2, %v1015_v1 }
 0x52f   :  { %v1014_v5 = vsel %vm1006_vm5, %v962_v37, %v1010_v3 }
 0x530   :  { %1203 = vmatpush3.bf16.msra.mxu1 %v1019_v4  ;;  %v1018_v7 = vpack.c.bf16 %v1014_v5, %v1013_v6 }
 0x531   :  { %1204 = vmatprep.subr.bf16.mxu1 %v1361_v14 }
 0x534   :  { %1205 = vmatpush3.bf16.msra.mxu1 %v1018_v7 }
 0x537   :  { %1207 = vmatmul.mubr.msk.bf16.vlgmr.msra.gmra.mxu1 %vm494_vm7, %v1017_v12 }
 0x5f7   :  { %v1063_v15 = vpop.f32.mrf.mxu1 }
 0x5f8   :  { %v1064_v16 = vadd.f32 %v1063_v15, %v1024_v13 }
 0x5f9   :  { %v1208_v18 = vpop.f32.mrf.mxu1 }
 0x5fa   :  { %1069 = vst [vmem:[%s1491_s4] sm:$0xf] %v1064_v16 }
 0x5fb   :  { %v1066_v19 = vpop.f32.mrf.mxu1 }
 0x5fd   :  { %v1209_v20 = vpop.f32.mrf.mxu1 }
 0x5fe   :  { %1074 = vsyncpa [#allocation3], 1 }

</bundles_post_ra>
